<compile_context>
chip_gen: v5e
topology: v5e:2x2
jax: 0.10.0
libtpu: 0.0.40
codegen_flags: <defaults>
</compile_context>

<pallas_src>
import numpy as np
import jax
import jax.numpy as jnp
from jax.experimental import pallas as pl
from jax.experimental.pallas import tpu as pltpu


def _round_up(x, m):
    return (x + m - 1) // m * m


def _vmem_limit_bytes():
    """Per-generation scoped-VMEM limit: ~3/4 of physical VMEM, capped at 64 MiB
    (48 MiB on v7x's 64 MiB VMEM, 64 MiB on v5e/v6e's 128 MiB)."""
    cap = 64 << 20                      # conservative fallback (v7x per-TensorCore)
    try:
        cap = int(pltpu.get_tpu_info().vmem_capacity_bytes)
    except Exception:
        pass
    return max(32 << 20, min(cap * 3 // 4, 64 << 20))


def _pick_t_tile(T_in, B, in_row_bytes, out_row_bytes, acc_row_bytes,
                 vmem_limit, fixed_bytes, max_tile=1024):
    """Biggest time tile whose double-buffered in/out blocks + f32 accumulator fit the
    VMEM budget (the grid-invariant weight/bias buffers are counted in fixed_bytes)."""
    budget = max(4 << 20, vmem_limit - fixed_bytes - (2 << 20))
    per_row = 2 * (in_row_bytes + out_row_bytes) + 2 * acc_row_bytes
    t = min(max_tile, budget // per_row)
    t = max(8, (t // 8) * 8)
    t8 = _round_up(T_in, 8)
    t = min(t, t8)
    # Only force a >=2-way time split when batch alone cannot feed v7x's two
    # TensorCores (B == 1); on single-TC v5e/v6e this costs at most one grid step.
    if B == 1 and t8 > 8 and -(-t8 // t) < 2:
        t = max(8, _round_up(-(-t8 // 2), 8))
    return t


def _deconv_kernel(x_ref, h_ref, w_ref, b_ref, o_ref, win_ref):
    # x_ref:   (1, T_TILE, C_in)   bf16 current time tile (time-major)
    # h_ref:   (1, 1, H, C_in)     bf16 causal halo (last rows of the previous tile;
    #                              zeros for tile 0). Only the last M-1 rows are read.
    # w_ref:   (M, C_in, N_pad)    bf16 polyphase weight  w[d, ci, r*C_out+co]
    # b_ref:   (1, N_pad)          f32 phase-tiled bias (zero in padded lanes)
    # o_ref:   (1, T_TILE, N_pad)  bf16 output; row j, lane r*C_out+co -> time j*S + r
    # win_ref: (H + T_TILE, C_in)  bf16 VMEM scratch window  [halo | tile]
    T_TILE = x_ref.shape[1]
    H = h_ref.shape[2]
    M = w_ref.shape[0]
    N_pad = o_ref.shape[2]

    # Assemble the causal window once in VMEM (both stores are sublane-tile aligned).
    win_ref[0:H, :] = h_ref[0, 0]
    win_ref[H:H + T_TILE, :] = x_ref[0]

    # f32 accumulation on the MXU, bias folded into the accumulator init.
    acc = jnp.broadcast_to(b_ref[...], (T_TILE, N_pad)).astype(jnp.float32)
    for d in range(M):                      # static unroll over the M polyphase taps
        acc = acc + jnp.dot(win_ref[H - d:H - d + T_TILE, :], w_ref[d],
                            preferred_element_type=jnp.float32)
    o_ref[0] = acc.astype(o_ref.dtype)      # bf16 store: halves output HBM traffic


def causal_conv_transpose1d(x_ncw, weight, bias, stride, *,
                            compute_dtype=jnp.bfloat16,
                            out_dtype=jnp.bfloat16,
                            layout="NWC"):
    """Forward pass of kantts CausalConvTranspose1d.

    x_ncw:  (B, C_in, T_in)   input in the PyTorch NCW layout
    weight: (C_in, C_out, K)  effective ConvTranspose1d weight (weight_norm folded)
    bias:   (C_out,)
    Returns (B, T_in*stride, C_out) for layout="NWC" (preferred — no epilogue
    transpose) or (B, C_out, T_in*stride) for layout="NCW" (module layout).
    """
    B, C_in, T_in = x_ncw.shape
    C_in_w, C_out, K = weight.shape
    assert C_in_w == C_in
    S = int(stride)
    assert K > S, "causal crop (K - stride) requires kernel_size > stride"
    M = -(-K // S)                       # ceil(K / S): number of polyphase taps
    N = S * C_out
    N_pad = _round_up(N, 128)            # lane-dense output width
    H = max(16, _round_up(M - 1, 16))    # halo rows, padded to a bf16 sublane tile

    # ---- glue: polyphase weight  w3[d, ci, r*C_out+co] = W[ci, co, d*S + r] ----
    w_pad = jnp.pad(weight.astype(jnp.float32), ((0, 0), (0, 0), (0, M * S - K)))
    w3 = w_pad.reshape(C_in, C_out, M, S).transpose(2, 0, 3, 1).reshape(M, C_in, N)
    w3 = jnp.pad(w3, ((0, 0), (0, 0), (0, N_pad - N))).astype(compute_dtype)
    b2 = jnp.pad(jnp.tile(bias.astype(jnp.float32), S), (0, N_pad - N)).reshape(1, N_pad)

    # ---- glue: time-major bf16 activations (single cast+transpose pass; NO im2col) ----
    x_tlc = jnp.transpose(x_ncw, (0, 2, 1)).astype(compute_dtype)    # (B, T_in, C_in)

    # ---- tiling: VMEM-budgeted per TPU generation ----
    in_item = jnp.dtype(compute_dtype).itemsize
    out_item = jnp.dtype(out_dtype).itemsize
    vmem_limit = _vmem_limit_bytes()
    fixed_bytes = 2 * (M * C_in * N_pad * in_item) + 2 * (N_pad * 4)  # invariant w/b bufs
    T_TILE = _pick_t_tile(T_in, B, C_in * in_item, N_pad * out_item, N_pad * 4,
                          vmem_limit, fixed_bytes)
    T_p = _round_up(T_in, T_TILE)
    n_t = T_p // T_TILE
    x_t = x_tlc if T_p == T_in else jnp.pad(x_tlc, ((0, 0), (0, T_p - T_in), (0, 0)))

    # ---- glue: tiny per-tile causal halo  halo[b, t] = x[t*T_TILE - H : t*T_TILE] ----
    x_hist = jnp.pad(x_t, ((0, 0), (H, 0), (0, 0)))                  # (B, T_p + H, C_in)
    if T_TILE >= H:
        halo = x_hist[:, :n_t * T_TILE, :].reshape(B, n_t, T_TILE, C_in)[:, :, :H, :]
    else:  # tiny-input fallback
        halo = jnp.stack([x_hist[:, t * T_TILE:t * T_TILE + H, :] for t in range(n_t)],
                         axis=1)

    grid = (B, n_t)
    flops = 2 * B * T_p * (M * C_in) * N_pad
    bytes_accessed = (B * T_p * C_in * in_item                # activations (read once)
                      + B * n_t * H * C_in * in_item          # halos (tiny)
                      + M * C_in * N_pad * in_item            # weight
                      + N_pad * 4                             # bias
                      + B * T_p * N_pad * out_item)           # bf16 output

    out = pl.pallas_call(
        _deconv_kernel,
        out_shape=jax.ShapeDtypeStruct((B, T_p, N_pad), out_dtype),
        grid=grid,
        in_specs=[
            pl.BlockSpec((1, T_TILE, C_in), lambda b, t: (b, t, 0)),
            pl.BlockSpec((1, 1, H, C_in), lambda b, t: (b, t, 0, 0)),
            pl.BlockSpec((M, C_in, N_pad), lambda b, t: (0, 0, 0)),
            pl.BlockSpec((1, N_pad), lambda b, t: (0, 0)),
        ],
        out_specs=pl.BlockSpec((1, T_TILE, N_pad), lambda b, t: (b, t, 0)),
        scratch_shapes=[pltpu.VMEM((H + T_TILE, C_in), compute_dtype)],
        compiler_params=pltpu.CompilerParams(
            dimension_semantics=("parallel", "parallel"),
            vmem_limit_bytes=int(vmem_limit),
        ),
        cost_estimate=pl.CostEstimate(flops=int(flops), transcendentals=0,
                                      bytes_accessed=int(bytes_accessed)),
    )(x_t, halo, w3, b2)

    # Epilogue: when N == N_pad and T_in is a tile multiple (true for most real
    # HiFi-GAN layer sizes) the slice is skipped and the reshape is a pure bitcast.
    if T_p != T_in or N_pad != N:
        out = out[:, :T_in, :N]
    out = out.reshape(B, T_in * S, C_out)            # fold the S phases into time
    if layout.upper() == "NCW":
        out = jnp.transpose(out, (0, 2, 1))          # only if the consumer insists
    return out


def _ref_causal_conv_transpose1d(x, w, b, stride):
    """Naive numpy reference of ConvTranspose1d + causal crop (NCW layout)."""
    x, w, b = np.asarray(x), np.asarray(w), np.asarray(b)
    B, C_in, T = x.shape
    _, C_out, K = w.shape
    T_full = (T - 1) * stride + K
    out = np.zeros((B, C_out, T_full), np.float32)
    for i in range(T):
        out[:, :, i * stride:i * stride + K] += np.einsum('bc,cok->bok', x[:, :, i], w)
    out += b[None, :, None]
    return out[:, :, :T * stride]    # drop last (K - stride) samples (causal crop)


if __name__ == "__main__":
    # Module hyper-parameters (K > stride as required by the causal crop).
    B, C_in, C_out = 2, 4, 8
    K, stride = 8, 4
    T_in = 16

    key = jax.random.PRNGKey(0)
    k_v, k_g, k_b, k_x = jax.random.split(key, 4)

    # weight_norm parametrization: weight = g * v / ||v||, norm over dims (1, 2).
    v = 0.01 * jax.random.normal(k_v, (C_in, C_out, K), jnp.float32)
    g = 0.5 + jax.random.uniform(k_g, (C_in, 1, 1), jnp.float32)
    v_norm = jnp.sqrt(jnp.sum(v * v, axis=(1, 2), keepdims=True))
    weight = g * v / v_norm                                    # (C_in, C_out, K)
    bias = 0.1 * jax.random.normal(k_b, (C_out,), jnp.float32)

    x = jax.random.normal(k_x, (B, C_in, T_in), jnp.float32)   # (B, C_in, T_in)

    fwd = jax.jit(lambda x_, w_, b_: causal_conv_transpose1d(x_, w_, b_, stride))
    y = jax.block_until_ready(fwd(x, weight, bias))            # (B, T_in*S, C_out) NWC

    y_ref = _ref_causal_conv_transpose1d(x, weight, bias, stride)   # (B, C_out, T) NCW
    assert y.shape == (B, T_in * stride, C_out), y.shape
    # bf16 operands + bf16 output / f32 accumulation -> relaxed tolerance vs f32 ref.
    np.testing.assert_allclose(np.asarray(y, np.float32),
                               np.transpose(y_ref, (0, 2, 1)),
                               rtol=3e-2, atol=3e-2)
    print("KERNEL_OK")
</pallas_src>

<mosaic_0001>
module attributes {stable_mosaic.version = 11 : i64} {
  func.func @_deconv_kernel(%arg0: i32, %arg1: i32, %arg2: memref<1x16x4xbf16, #tpu.memory_space<vmem>>, %arg3: memref<1x1x16x4xbf16, #tpu.memory_space<vmem>>, %arg4: memref<2x4x128xbf16, #tpu.memory_space<vmem>>, %arg5: memref<1x128xf32, #tpu.memory_space<vmem>>, %arg6: memref<1x16x128xbf16, #tpu.memory_space<vmem>>, %arg7: memref<32x4xbf16, #tpu.memory_space<vmem>>) attributes {dimension_semantics = [#tpu.dimension_semantics<parallel>, #tpu.dimension_semantics<parallel>], iteration_bounds = array<i64: 2, 1>, scalar_prefetch = 0 : i64, scratch_operands = 1 : i64, tpu.core_type = #tpu.core_type<tc>, window_params = [{transform_indices = @transform_0, window_bounds = array<i64: 1, 16, 4>}, {transform_indices = @transform_1, window_bounds = array<i64: 1, 1, 16, 4>}, {pipeline_mode = #tpu.pipeline_mode<synchronous>, transform_indices = @transform_2, window_bounds = array<i64: 2, 4, 128>}, {pipeline_mode = #tpu.pipeline_mode<synchronous>, transform_indices = @transform_3, window_bounds = array<i64: 1, 128>}, {transform_indices = @transform_4, window_bounds = array<i64: 1, 16, 128>}]} {
    %c0 = arith.constant 0 : index
    %c0_0 = arith.constant 0 : index
    %c0_1 = arith.constant 0 : index
    %c0_2 = arith.constant 0 : index
    %0 = vector.load %arg3[%c0, %c0_0, %c0_1, %c0_2] : memref<1x1x16x4xbf16, #tpu.memory_space<vmem>>, vector<1x1x16x4xbf16>
    %1 = vector.shape_cast %0 : vector<1x1x16x4xbf16> to vector<16x4xbf16>
    %c0_3 = arith.constant 0 : index
    %c0_4 = arith.constant 0 : index
    %2 = vector.load %arg7[%c0_3, %c0_4] : memref<32x4xbf16, #tpu.memory_space<vmem>>, vector<16x4xbf16>
    tpu.vector_store %arg7[%c0_3, %c0_4], %1 {strides = array<i32>} : memref<32x4xbf16, #tpu.memory_space<vmem>>, vector<16x4xbf16>,
    %c0_5 = arith.constant 0 : index
    %c0_6 = arith.constant 0 : index
    %c0_7 = arith.constant 0 : index
    %3 = vector.load %arg2[%c0_5, %c0_6, %c0_7] : memref<1x16x4xbf16, #tpu.memory_space<vmem>>, vector<1x16x4xbf16>
    %4 = vector.shape_cast %3 : vector<1x16x4xbf16> to vector<16x4xbf16>
    %c16 = arith.constant 16 : index
    %c0_8 = arith.constant 0 : index
    %5 = vector.load %arg7[%c16, %c0_8] : memref<32x4xbf16, #tpu.memory_space<vmem>>, vector<16x4xbf16>
    tpu.vector_store %arg7[%c16, %c0_8], %4 {strides = array<i32>} : memref<32x4xbf16, #tpu.memory_space<vmem>>, vector<16x4xbf16>,
    %c0_9 = arith.constant 0 : index
    %c0_10 = arith.constant 0 : index
    %6 = vector.load %arg5[%c0_9, %c0_10] : memref<1x128xf32, #tpu.memory_space<vmem>>, vector<1x128xf32>
    %7 = vector.shape_cast %6 : vector<1x128xf32> to vector<1x128xf32>
    %8 = vector.broadcast %7 : vector<1x128xf32> to vector<16x128xf32>
    %c16_11 = arith.constant 16 : index
    %c0_12 = arith.constant 0 : index
    %9 = vector.load %arg7[%c16_11, %c0_12] : memref<32x4xbf16, #tpu.memory_space<vmem>>, vector<16x4xbf16>
    %c0_13 = arith.constant 0 : index
    %c0_14 = arith.constant 0 : index
    %c0_15 = arith.constant 0 : index
    %10 = vector.load %arg4[%c0_13, %c0_14, %c0_15] : memref<2x4x128xbf16, #tpu.memory_space<vmem>>, vector<1x4x128xbf16>
    %11 = vector.shape_cast %10 : vector<1x4x128xbf16> to vector<4x128xbf16>
    %cst = arith.constant dense<0.000000e+00> : vector<16x128xf32>
    %12 = tpu.matmul %9, %11, %cst {dimension_numbers = #tpu.dot_dimension_numbers<[1], [0], [0], [1], [0, 0, 1, 1], [], []>} : vector<16x4xbf16>, vector<4x128xbf16>, vector<16x128xf32> -> vector<16x128xf32>
    %13 = arith.addf %8, %12 : vector<16x128xf32>
    %c15 = arith.constant 15 : index
    %c0_16 = arith.constant 0 : index
    %14 = vector.load %arg7[%c15, %c0_16] : memref<32x4xbf16, #tpu.memory_space<vmem>>, vector<16x4xbf16>
    %c1 = arith.constant 1 : index
    %c0_17 = arith.constant 0 : index
    %c0_18 = arith.constant 0 : index
    %15 = vector.load %arg4[%c1, %c0_17, %c0_18] : memref<2x4x128xbf16, #tpu.memory_space<vmem>>, vector<1x4x128xbf16>
    %16 = vector.shape_cast %15 : vector<1x4x128xbf16> to vector<4x128xbf16>
    %cst_19 = arith.constant dense<0.000000e+00> : vector<16x128xf32>
    %17 = tpu.matmul %14, %16, %cst_19 {dimension_numbers = #tpu.dot_dimension_numbers<[1], [0], [0], [1], [0, 0, 1, 1], [], []>} : vector<16x4xbf16>, vector<4x128xbf16>, vector<16x128xf32> -> vector<16x128xf32>
    %18 = arith.addf %13, %17 : vector<16x128xf32>
    %19 = arith.truncf %18 : vector<16x128xf32> to vector<16x128xbf16>
    %c0_20 = arith.constant 0 : index
    %c0_21 = arith.constant 0 : index
    %c0_22 = arith.constant 0 : index
    %20 = vector.load %arg6[%c0_20, %c0_21, %c0_22] : memref<1x16x128xbf16, #tpu.memory_space<vmem>>, vector<1x16x128xbf16>
    %21 = vector.shape_cast %20 : vector<1x16x128xbf16> to vector<16x128xbf16>
    %22 = vector.shape_cast %19 : vector<16x128xbf16> to vector<1x16x128xbf16>
    tpu.vector_store %arg6[%c0_20, %c0_21, %c0_22], %22 {strides = array<i32>} : memref<1x16x128xbf16, #tpu.memory_space<vmem>>, vector<1x16x128xbf16>,
    return
  }
  func.func @transform_0(%arg0: i32, %arg1: i32) -> (i32, i32, i32) {
    %c0_i32 = arith.constant 0 : i32
    %c0_i32_0 = arith.constant 0 : i32
    return %arg0, %arg1, %c0_i32 : i32, i32, i32
  }
  func.func @transform_1(%arg0: i32, %arg1: i32) -> (i32, i32, i32, i32) {
    %c0_i32 = arith.constant 0 : i32
    %c0_i32_0 = arith.constant 0 : i32
    %c0_i32_1 = arith.constant 0 : i32
    return %arg0, %arg1, %c0_i32, %c0_i32_0 : i32, i32, i32, i32
  }
  func.func @transform_2(%arg0: i32, %arg1: i32) -> (i32, i32, i32) {
    %c0_i32 = arith.constant 0 : i32
    %c0_i32_0 = arith.constant 0 : i32
    %c0_i32_1 = arith.constant 0 : i32
    %c0_i32_2 = arith.constant 0 : i32
    return %c0_i32, %c0_i32_0, %c0_i32_1 : i32, i32, i32
  }
  func.func @transform_3(%arg0: i32, %arg1: i32) -> (i32, i32) {
    %c0_i32 = arith.constant 0 : i32
    %c0_i32_0 = arith.constant 0 : i32
    %c0_i32_1 = arith.constant 0 : i32
    return %c0_i32, %c0_i32_0 : i32, i32
  }
  func.func @transform_4(%arg0: i32, %arg1: i32) -> (i32, i32, i32) {
    %c0_i32 = arith.constant 0 : i32
    %c0_i32_0 = arith.constant 0 : i32
    return %arg0, %arg1, %c0_i32 : i32, i32, i32
  }
}

</mosaic_0001>

<bundles_post_ra>
// kernel: tile.9
= control target key start
LH: loop header
LB: loop body
LE: loop exit
PB: predicated region body
PF: predicated region fallthrough
CT: control target
= control target key end

     0   :  { %s37_s8 = smov 8   ;;  %s38_s9 = smov 16   ;;  %vm7_vm0 = vcmask 64512   ;;  %vm13_vm1 = vcmask 261312   ;;  %vm19_vm2 = vcmask 195712   ;;  %vm25_vm3 = vcmask 130112   ;;  %s55_s0 = inlined_call_operand.vmem [shape: f32[4,8], index: 0, kind: input, shape index: {}]   ;;  %s56_s1 = inlined_call_operand.vmem [shape: f32[32], index: 1, kind: output, shape index: {}]  }
   0x1   :  { %v4_v0 = vld [vmem:[%s55_s0] sm:$0xf]  ;;  %s36_s0 = smov 24  }
   0x2   :  { %5 = vst [vmem:[#allocation1] sm:$0xf] %v4_v0 }
   0x9   :  { %v10_v1 = vld [vmem:[#allocation1 + $0x3] sm:$0x1]   ;;  %v22_v2 = vld [vmem:[#allocation1 + $0x1] sm:$0x1]   ;;  %v16_v3 = vld [vmem:[#allocation1 + $0x2] sm:$0x1]  }
   0xa   :  { %11 = vrot.lane.b32.xlu0 %v10_v1, %s36_s0  ;;  %23 = vrot.lane.b32.xlu1 %v22_v2, %s37_s8  ;;  %v6_v4 = vld [vmem:[#allocation1] sm:$0x1]  }
   0xb   :  { %8 = vst.msk [vmem:[#allocation0] sm:$0x1] %vm7_vm0, %v6_v4  }
  0x12   :  { %17 = vrot.lane.b32.xlu0 %v16_v3, %s38_s9 }
  0x7c   :  { %v12_v5 = vpop.permute.xlu0 %11   ;;  %v24_v6 = vpop.permute.xlu1 %23  }
  0x7d   :  { %14 = vst.msk [vmem:[#allocation0] sm:$0x1] %vm13_vm1, %v12_v5  }
  0x84   :  { %v18_v7 = vpop.permute.xlu0 %17  }
  0x85   :  { %20 = vst.msk [vmem:[#allocation0] sm:$0x1] %vm19_vm2, %v18_v7  }
  0x86   :  { %26 = vst.msk [vmem:[#allocation0] sm:$0x1] %vm25_vm3, %v24_v6  }
  0x8d   :  { %v29_v8 = vld [vmem:[#allocation0] sm:$0x1] }
  0x8e   :  { %32 = vst [vmem:[%s56_s1] sm:$0x1] %v29_v8 }

// kernel: tile.8
= control target key start
LH: loop header
LB: loop body
LE: loop exit
PB: predicated region body
PF: predicated region fallthrough
CT: control target
= control target key end

     0   :  { %s22_s0 = inlined_call_operand.vmem [shape: f32[8], index: 0, kind: input, shape index: {}]   ;;  %s23_s1 = inlined_call_operand.vmem [shape: f32[4,8], index: 1, kind: output, shape index: {}]  }
   0x1   :  { %v4_v0 = vld [vmem:[%s22_s0] ss:$0 sm:$0xff] }
   0x2   :  { %5 = vst [vmem:[%s23_s1] sm:$0xf] %v4_v0 }

// kernel: _lambda_.1
= control target key start
LH: loop header
LB: loop body
LE: loop exit
PB: predicated region body
PF: predicated region fallthrough
CT: control target
= control target key end

     0   :  { %s584_s15 = smov 0   ;;  %s586_s16 = smov 0   ;;  %s636_s0 = inlined_call_operand.vmem [shape: bf16[2,16,4], index: 0, kind: input, shape index: {}]   ;;  %s637_s1 = inlined_call_operand.vmem [shape: bf16[2,1,16,4], index: 1, kind: input, shape index: {}]   ;;  %s638_s2 = inlined_call_operand.vmem [shape: bf16[2,4,128], index: 2, kind: input, shape index: {}]   ;;  %s639_s3 = inlined_call_operand.vmem [shape: f32[1,128], index: 3, kind: input, shape index: {}]   ;;  %s640_s4 = inlined_call_operand.vmem [shape: bf16[2,16,128], index: 4, kind: output, shape index: {}]  }
   0x1   :  { %s588_s17 = smov 0  }
   0x2 LB: > { %s26_s18 = sadd.s32 1, %s553_s16  ;;  %p480_p0 = scmp.ge.s32.totalorder %s557_s17, 1  ;;  %s557_s17 = sphi %s588_s17, %s14_s17   ;;  %s553_s16 = sphi %s586_s16, %s642_s16   ;;  %s549_s15 = sphi %s584_s15, %s641_s15  }
   0x3   : > { %p28_p1 = scmp.ge.s32.totalorder %s26_s18, 2  ;;  %p199_p2 = scmp.lt.s32.totalorder %s557_s17, 3 }
   0x5   : > { %s644_s18 = smov (%p28_p1, %s26_s18), 0  ;;  %p200_p3 = pnand %p480_p0, %p199_p2 }
   0x6   : > { %p243_p4 = scmp.lt.s32.totalorder (!%p200_p3), %s549_s15, 1 }
   0x7   : > { %203 = sbr.rel (%p200_p3) target bundleno = 176 (0xb0), region = 36 }
   0xc   : > { %v287_v0 = vld [vmem:[%s638_s2] sm:$0x3]  ;;  %vm297_vm0 = vcmask 1041408   ;;  %v488_v2 = vld [vmem:[%s638_s2 + $0x2] sm:$0x3]  ;;  %s646_s15 = smov (!%p243_p4, %s549_s15), 1 }
   0xd   : > { %v299_v1 = vsel %vm297_vm0, %v287_v0, 0  ;;  %v346_v3 = vsel %vm297_vm0, %v488_v2, 0  ;;  %s608_s23 = sshll.u32 %s646_s15, 3  ;;  %vm274_vm1 = vcmask 27648   ;;  %vm293_vm2 = vcmask 31744  }
   0xe   : > { %308 = vmatpush.bf16.msra.mxu0 %v299_v1  ;;  %355 = vmatpush.bf16.msra.mxu1 %v346_v3  ;;  %s250_s26 = scalar_lea.vmem %s636_s0, %s608_s23  ;;  %s260_s29 = scalar_lea.vmem %s637_s1, %s608_s23  ;;  %vm324_vm3 = vsmask.f32 4352  ;;  %v534_v26 = vld [vmem:[%s639_s3] ss:$0 sm:$0xff] }
   0xf   : > { %v273_v4 = vld [vmem:[%s260_s29 + $0x4] sm:$0xf]  ;;  %v277_v5 = vld [vmem:[%s250_s26] sm:$0xf]  ;;  %s269_s8 = scalar_lea.vmem %s640_s4, %s608_s23 }
  0x10   : > { %v278_v6 = vld [vmem:[%s250_s26 + $0x4] sm:$0xf]  ;;  %276 = vst.msk [vmem:[#allocation2 + $0x4] sm:$0xf] %vm274_vm1, %v273_v4 }
  0x11   : > { %279 = vst.msk [vmem:[#allocation2 + $0x8] sm:$0xf] %vm274_vm1, %v277_v5 }
  0x12   : > { %280 = vst.msk [vmem:[#allocation2 + $0xc] sm:$0xf] %vm274_vm1, %v278_v6 }
  0x17   : > { %v507_v7 = vld [vmem:[#allocation2 + $0x4] sm:$0x8] }
  0x18   : > { %v509_v8 = vld [vmem:[#allocation2 + $0x4] sm:$0xf0]  }
  0x19   : > { %v504_v9 = vld [vmem:[#allocation2 + $0x8] sm:$0xff]   ;;  %v508_v10 = vor.u32 %v509_v8, %v507_v7 }
  0x1a   : > { %v498_v11 = vunpack.c.h.b16 %v504_v9  ;;  %487 = vmatmul.msk.bf16.vlgmr.msra.gmra.mxu0 %vm293_vm2, %v504_v9 }
  0x1b   : > { %v326_v12 = vshrl.u32 %v508_v10, 16  ;;  %v329_v13 = vshll.u32 %v508_v10, 16 }
  0x1c   : > { %v323_v14 = vpack.c.b16 %v498_v11, %v498_v11 }
  0x1d   : > { %v328_v15 = vrot.slane %v326_v12, 3  ;;  %v331_v16 = vrot.slane %v329_v13, 4 }
  0x1e   : > { %v334_v17 = vshrl.u32 %v323_v14, 16  ;;  %v337_v18 = vshll.u32 %v323_v14, 16 }
  0x1f   : > { %v332_v21 = vor.u32 %v331_v16, %v328_v15 }
  0x20   : > { %v336_v19 = vrot.slane %v334_v17, 3  ;;  %v339_v20 = vrot.slane %v337_v18, 4 }
  0x22   : > { %v340_v22 = vor.u32 %v339_v20, %v336_v19 }
  0x24   : > { %v341_v23 = vsel %vm324_vm3, %v332_v21, %v340_v22 }
  0x25   : > { %489 = vmatmul.msk.bf16.vlgmr.msra.gmra.mxu1 %vm293_vm2, %v341_v23 }
  0x97   : > { %v310_v24 = vpop.f32.mrf.mxu0 }
  0x98   : > { %v315_v28 = vadd.f32 %v534_v26, %v310_v24 }
  0x9f   : > { %v312_v27 = vpop.f32.mrf.mxu0 }
  0xa0   : > { %v316_v29 = vadd.f32 %v534_v26, %v312_v27 }
  0xa2   : > { %v357_v25 = vpop.f32.mrf.mxu1 }
  0xa3   : > { %v362_v31 = vadd.f32 %v357_v25, %v315_v28 }
  0xaa   : > { %v359_v30 = vpop.f32.mrf.mxu1 }
  0xab   : > { %v363_v32 = vadd.f32 %v359_v30, %v316_v29 }
  0xad   : > { %v502_v33 = vpack.c.bf16 %v363_v32, %v362_v31 }
  0xaf   : > { %503 = vst [vmem:[%s269_s8] sm:$0xff] %v502_v33  }
  0xb0 PF: > { %s14_s17 = sadd.s32 1, %s557_s17   ;;  %s641_s15 = smov %s553_s16 }
  0xb1   : > { %p11_p5 = scmp.ge.s32.totalorder %s14_s17, 4   ;;  %s642_s16 = smov %s644_s18 }
  0xb3   :  { %13 = sbr.rel (!%p11_p5) target bundleno = 2 (0x2), region = 70 }

</bundles_post_ra>
